<compile_context>
chip_gen: v7x
topology: tpu7x:2x2x1
jax: 0.10.0
libtpu: 0.0.40
codegen_flags: <defaults>
</compile_context>

<pallas_src>
import jax
import jax.numpy as jnp
import numpy as np
from jax import lax
from jax.experimental import pallas as pl
from jax.experimental.pallas import tpu as pltpu


# --------------------------------------------------------------------------
# glue helpers (plain JAX / Python, trace-time)
# --------------------------------------------------------------------------
def _bilinear_matrix(out_size, in_size):
    """Row-stochastic 1-D bilinear interpolation matrix, align_corners=False."""
    if in_size == 1:
        return jnp.ones((out_size, 1), dtype=jnp.float32)
    scale = in_size / out_size
    dst = jnp.arange(out_size, dtype=jnp.float32)
    src = jnp.clip((dst + 0.5) * scale - 0.5, 0.0, in_size - 1)
    lo = jnp.floor(src).astype(jnp.int32)
    hi = jnp.minimum(lo + 1, in_size - 1)
    w_hi = src - lo.astype(jnp.float32)
    w_lo = 1.0 - w_hi
    rows = jnp.arange(out_size)
    m = jnp.zeros((out_size, in_size), jnp.float32)
    m = m.at[rows, lo].add(w_lo)
    m = m.at[rows, hi].add(w_hi)
    return m


def _pick_spatial_tile(hw, c, budget_bytes=24 * 1024 * 1024):
    """Largest lane-dense tile of the flattened spatial axis whose
    double-buffered x/out/gate blocks fit a v7x-safe VMEM budget."""
    def tile_bytes(ts):
        # 2 pipeline buffers x [x (C,ts) + out (C,ts) + gate (1->8 sublanes, ts)] f32
        return 2 * (2 * c * ts + 8 * ts) * 4

    candidates = (4096, 2048, 1024, 512, 256, 128)
    for ts in candidates:
        if hw % ts == 0 and tile_bytes(ts) <= budget_bytes:
            return ts, hw
    # pad the flattened spatial axis to a multiple of 128 and retry
    hw_p = ((hw + 127) // 128) * 128
    for ts in candidates:
        if hw_p % ts == 0 and tile_bytes(ts) <= budget_bytes:
            return ts, hw_p
    return 128, hw_p


def _vmem_limit(nbytes):
    """Scoped-VMEM request: 2x estimate + headroom, clamped to [32, 64] MiB."""
    return int(min(max(2 * nbytes + (8 << 20), 32 << 20), 64 << 20))


# --------------------------------------------------------------------------
# kernel 1: coarse attention map, grid = (batch,)
# --------------------------------------------------------------------------
def _coarse_attention_kernel(patch_ref, g_ref, wth_ref, wphi_ref, bphi_ref,
                             wpsi_ref, bpsi_ref, kup_ref, ahu_ref, awuT_ref,
                             border_ref, sig_ref, s2d_scr):
    Ht, Wt = s2d_scr.shape

    # theta(x): 2x2 / stride-2 / pad-1 conv as an im2col matmul -> (inter, Ht*Wt)
    theta = jnp.dot(wth_ref[...], patch_ref[0],
                    preferred_element_type=jnp.float32)
    # phi(g): 1x1 conv + bias                                    -> (inter, Hg*Wg)
    phi = (jnp.dot(wphi_ref[...], g_ref[0],
                   preferred_element_type=jnp.float32) + bphi_ref[...])
    # bilinear upsample of phi to the theta resolution: one dense matmul with a
    # precomputed Kronecker interpolation operator (flat layout, no bridging).
    phi_up = jnp.dot(phi, kup_ref[...],
                     preferred_element_type=jnp.float32)         # (inter, Ht*Wt)

    f = jnp.maximum(theta + phi_up, 0.0)

    # psi 1x1 conv as one matmul + SMEM scalar bias               -> (1, Ht*Wt)
    psi = (jnp.dot(wpsi_ref[...], f, preferred_element_type=jnp.float32)
           + bpsi_ref[0, 0])
    s_flat = pl.reciprocal(1.0 + jnp.exp(-psi), approx=True)      # sigmoid

    # bridge the single-channel (1, Ht*Wt) map to 2-D (Ht, Wt) scratch with Ht
    # static row copies (avoids an unsupported lane->sublane vector reshape).
    for i in range(Ht):
        s2d_scr[i:i + 1, :] = s_flat[0:1, i * Wt:(i + 1) * Wt]

    # separable bilinear upsample of the interior to the input resolution; the
    # psi padding=1 border contributes sigmoid(b_psi) via the precomputed
    # residual-mass "border" array.
    inner = jnp.dot(
        ahu_ref[...],
        jnp.dot(s2d_scr[...], awuT_ref[...], preferred_element_type=jnp.float32),
        preferred_element_type=jnp.float32)                        # (H, W)
    sig_ref[0] = (inner + border_ref[...]).astype(sig_ref.dtype)


# --------------------------------------------------------------------------
# kernel 2: gated 1x1 W-conv + folded BatchNorm, grid = (batch, spatial tiles)
# --------------------------------------------------------------------------
def _gated_wconv_kernel(x_ref, gate_ref, wf_ref, bf_ref, out_ref):
    # W(sig * x) + b == sig * (W_fold @ x) + b_fold   (gate is per pixel)
    wx = jnp.dot(wf_ref[...], x_ref[0], preferred_element_type=jnp.float32)
    gate = gate_ref[0]                                             # (1, ts)
    out_ref[0] = (wx * gate + bf_ref[...]).astype(out_ref.dtype)


# --------------------------------------------------------------------------
# wrapper
# --------------------------------------------------------------------------
def grid_attention_forward(x_nchw, g_nchw, params):
    B, C, H, W = x_nchw.shape
    Bg, Cg, Hg, Wg = g_nchw.shape
    assert B == Bg
    inter = params["w_theta"].shape[0]

    x_nchw = x_nchw.astype(jnp.float32)
    g_nchw = g_nchw.astype(jnp.float32)

    # theta conv output size (kernel=2, stride=2, pad=1)
    Ht = (H + 2 - 2) // 2 + 1
    Wt = (W + 2 - 2) // 2 + 1
    Hp, Wp = Ht + 2, Wt + 2          # psi output is zero-padded by 1 per side
    HW, HtWt, HgWg = H * W, Ht * Wt, Hg * Wg

    # ---- im2col patches for the theta conv, (ky,kx) major / c minor order ----
    # TODO(synk): ~|x| extra HBM write; replace with in-kernel strided loads.
    x_pad = jnp.pad(x_nchw, ((0, 0), (0, 0), (1, 1), (1, 1)))
    parts = [x_pad[:, :, ky::2, kx::2][:, :, :Ht, :Wt]
             for ky in range(2) for kx in range(2)]
    patches = jnp.concatenate(parts, axis=1).reshape(B, 4 * C, HtWt)

    # conv weights in channels-first matmul form
    w_theta = jnp.transpose(params["w_theta"], (0, 2, 3, 1)).reshape(inter, 4 * C)
    w_phi = params["w_phi"][:, :, 0, 0]                       # (inter, Cg)
    b_phi = params["b_phi"].reshape(inter, 1)
    w_psi = params["w_psi"][:, :, 0, 0].reshape(1, inter)     # (1, inter)
    b_psi = params["b_psi"].reshape(1, 1)

    # fold conv bias + eval-mode BatchNorm into the W conv
    eps = 1e-5
    bn_scale = params["bn_gamma"] / jnp.sqrt(params["bn_var"] + eps)
    w_fold = params["w_W"][:, :, 0, 0] * bn_scale[:, None]    # (C, C)
    b_fold = (bn_scale * params["b_W"] + params["bn_beta"]
              - params["bn_mean"] * bn_scale).reshape(C, 1)

    # bilinear operators (align_corners=False, F.upsample default)
    a_hg = _bilinear_matrix(Ht, Hg)                           # (Ht, Hg)
    a_wg = _bilinear_matrix(Wt, Wg)                           # (Wt, Wg)
    k_up = jnp.kron(a_hg, a_wg).T                             # (HgWg, HtWt)
    a_hu_full = _bilinear_matrix(H, Hp)                       # (H, Hp)
    a_wu_full = _bilinear_matrix(W, Wp)                       # (W, Wp)
    a_hu = a_hu_full[:, 1:Ht + 1]                             # (H, Ht) interior
    a_wuT = a_wu_full[:, 1:Wt + 1].T                          # (Wt, W) interior
    rh = a_hu.sum(axis=1, keepdims=True)                      # (H, 1) interior mass
    rw = a_wu_full[:, 1:Wt + 1].sum(axis=1).reshape(1, W)     # (1, W)
    border = jax.nn.sigmoid(b_psi) * (1.0 - rh * rw)          # (H, W)

    g_flat = g_nchw.reshape(B, Cg, HgWg)

    # ------------------ kernel 1: coarse attention map ------------------
    coarse_bytes = 4 * (4 * C * HtWt + Cg * HgWg + HgWg * HtWt + H * Ht
                        + Wt * W + 2 * H * W + inter * (4 * C + Cg + 2)
                        + 4 * inter * HtWt + Ht * Wt)
    sig2d = pl.pallas_call(
        _coarse_attention_kernel,
        out_shape=jax.ShapeDtypeStruct((B, H, W), jnp.float32),
        grid_spec=pltpu.PrefetchScalarGridSpec(
            num_scalar_prefetch=0,
            grid=(B,),
            in_specs=[
                pl.BlockSpec((1, 4 * C, HtWt), lambda b: (b, 0, 0)),
                pl.BlockSpec((1, Cg, HgWg), lambda b: (b, 0, 0)),
                pl.BlockSpec((inter, 4 * C), lambda b: (0, 0)),
                pl.BlockSpec((inter, Cg), lambda b: (0, 0)),
                pl.BlockSpec((inter, 1), lambda b: (0, 0)),
                pl.BlockSpec((1, inter), lambda b: (0, 0)),
                pl.BlockSpec(memory_space=pltpu.MemorySpace.SMEM),
                pl.BlockSpec((HgWg, HtWt), lambda b: (0, 0)),
                pl.BlockSpec((H, Ht), lambda b: (0, 0)),
                pl.BlockSpec((Wt, W), lambda b: (0, 0)),
                pl.BlockSpec((H, W), lambda b: (0, 0)),
            ],
            out_specs=pl.BlockSpec((1, H, W), lambda b: (b, 0, 0)),
            scratch_shapes=[pltpu.VMEM((Ht, Wt), jnp.float32)]),
        compiler_params=pltpu.CompilerParams(
            dimension_semantics=("parallel",),
            vmem_limit_bytes=_vmem_limit(coarse_bytes)),
    )(patches, g_flat, w_theta, w_phi, b_phi, w_psi, b_psi,
      k_up, a_hu, a_wuT, border)

    # ------------------ kernel 2: gated W-conv + folded BN ------------------
    ts, HWp = _pick_spatial_tile(HW, C)
    x_flat = x_nchw.reshape(B, C, HW)
    sig_flat = sig2d.reshape(B, 1, HW)                        # zero-copy reshape
    if HWp != HW:
        x_flat = jnp.pad(x_flat, ((0, 0), (0, 0), (0, HWp - HW)))
        sig_flat = jnp.pad(sig_flat, ((0, 0), (0, 0), (0, HWp - HW)))
    n_sp = HWp // ts

    main_bytes = 4 * (2 * C * ts + 8 * ts + C * C + C)
    out_flat = pl.pallas_call(
        _gated_wconv_kernel,
        out_shape=jax.ShapeDtypeStruct((B, C, HWp), jnp.float32),
        grid_spec=pltpu.PrefetchScalarGridSpec(
            num_scalar_prefetch=0,
            grid=(B, n_sp),
            in_specs=[
                pl.BlockSpec((1, C, ts), lambda b, s: (b, 0, s)),
                pl.BlockSpec((1, 1, ts), lambda b, s: (b, 0, s)),
                pl.BlockSpec((C, C), lambda b, s: (0, 0)),
                pl.BlockSpec((C, 1), lambda b, s: (0, 0)),
            ],
            out_specs=pl.BlockSpec((1, C, ts), lambda b, s: (b, 0, s))),
        compiler_params=pltpu.CompilerParams(
            dimension_semantics=("parallel", "parallel"),
            vmem_limit_bytes=_vmem_limit(main_bytes)),
    )(x_flat, sig_flat, w_fold, b_fold)

    if HWp != HW:
        out_flat = out_flat[:, :, :HW]
    w_y = out_flat.reshape(B, C, H, W)
    sigm_psi_f = sig2d.reshape(B, 1, H, W)
    return w_y, sigm_psi_f


# --------------------------------------------------------------------------
# pure-JAX reference (NCHW, same math) for a sanity check
# --------------------------------------------------------------------------
def reference_forward(x, g, params):
    hi = lax.Precision.HIGHEST
    B, C, H, W = x.shape
    _, Cg, Hg, Wg = g.shape
    theta = lax.conv_general_dilated(
        x, params["w_theta"], (2, 2), ((1, 1), (1, 1)),
        dimension_numbers=("NCHW", "OIHW", "NCHW"), precision=hi)
    Ht, Wt = theta.shape[2], theta.shape[3]
    phi = (jnp.einsum("bchw,oc->bohw", g, params["w_phi"][:, :, 0, 0], precision=hi)
           + params["b_phi"][None, :, None, None])
    u_g2t = jnp.kron(_bilinear_matrix(Ht, Hg), _bilinear_matrix(Wt, Wg))
    phi_up = jnp.einsum("pq,bcq->bcp", u_g2t, phi.reshape(B, -1, Hg * Wg),
                        precision=hi).reshape(B, -1, Ht, Wt)
    f = jnp.maximum(theta + phi_up, 0.0)
    psi = jnp.einsum("bchw,oc->bohw", f, params["w_psi"][:, :, 0, 0], precision=hi)
    psi = jnp.pad(psi, ((0, 0), (0, 0), (1, 1), (1, 1))) + params["b_psi"][0]
    s = jax.nn.sigmoid(psi)                                 # (B, 1, Ht+2, Wt+2)
    Hp, Wp = Ht + 2, Wt + 2
    u_full = jnp.kron(_bilinear_matrix(H, Hp), _bilinear_matrix(W, Wp))
    s_up = jnp.einsum("pq,bcq->bcp", u_full, s.reshape(B, 1, Hp * Wp),
                      precision=hi).reshape(B, 1, H, W)
    y = s_up * x
    wy = (jnp.einsum("bchw,oc->bohw", y, params["w_W"][:, :, 0, 0], precision=hi)
          + params["b_W"][None, :, None, None])
    scale = params["bn_gamma"] / jnp.sqrt(params["bn_var"] + 1e-5)
    out = wy * scale[None, :, None, None] + (
        params["bn_beta"] - params["bn_mean"] * scale)[None, :, None, None]
    return out, s_up


# --------------------------------------------------------------------------
# deterministic parameter init (kaiming-style, synthetic)
# --------------------------------------------------------------------------
def init_params(key, in_channels, gating_channels, inter_channels):
    ks = jax.random.split(key, 8)

    def kaiming(k, shape, fan_in):
        return jax.random.normal(k, shape, jnp.float32) * jnp.sqrt(2.0 / fan_in)

    C, Cg, Ci = in_channels, gating_channels, inter_channels
    return dict(
        w_theta=kaiming(ks[0], (Ci, C, 2, 2), C * 4),
        w_phi=kaiming(ks[1], (Ci, Cg, 1, 1), Cg),
        b_phi=jax.random.normal(ks[2], (Ci,), jnp.float32) * 0.05,
        w_psi=kaiming(ks[3], (1, Ci, 1, 1), Ci),
        b_psi=jax.random.normal(ks[4], (1,), jnp.float32) * 0.05,
        w_W=kaiming(ks[5], (C, C, 1, 1), C),
        b_W=jax.random.normal(ks[6], (C,), jnp.float32) * 0.05,
        bn_gamma=1.0 + 0.02 * jax.random.normal(ks[7], (C,), jnp.float32),
        bn_beta=jnp.zeros((C,), jnp.float32),
        bn_mean=jnp.zeros((C,), jnp.float32),
        bn_var=jnp.ones((C,), jnp.float32),
    )


if __name__ == "__main__":
    B, C, H, W = 2, 8, 16, 16        # x: (b, in_channels, h, w)
    Cg, Hg, Wg = 16, 8, 8            # g: (b, gating_channels, hg, wg)
    inter = C // 2                   # inter_channels = in_channels // 2

    root = jax.random.PRNGKey(0)
    kx, kg, kp = jax.random.split(root, 3)
    x = jax.random.normal(kx, (B, C, H, W), jnp.float32)
    g = jax.random.normal(kg, (B, Cg, Hg, Wg), jnp.float32)
    params = init_params(kp, C, Cg, inter)

    fwd = jax.jit(grid_attention_forward)
    w_y, sigm_psi_f = jax.block_until_ready(fwd(x, g, params))

    ref_wy, ref_sig = jax.block_until_ready(reference_forward(x, g, params))
    np.testing.assert_allclose(np.asarray(w_y), np.asarray(ref_wy),
                               rtol=3e-2, atol=3e-2)
    np.testing.assert_allclose(np.asarray(sigm_psi_f), np.asarray(ref_sig),
                               rtol=3e-2, atol=3e-2)

    print("KERNEL_OK")
</pallas_src>

<mosaic_0001>
module attributes {stable_mosaic.version = 11 : i64} {
  func.func private @main(%arg0: i32) attributes {dimension_semantics = [#tpu.dimension_semantics<core_parallel>], iteration_bounds = array<i64: 2>, tpu.core_type = #tpu.core_type<sc_scalar_subcore>, window_params = []} {
    return
  }
}

module attributes {stable_mosaic.version = 11 : i64} {
  func.func private @main(%arg0: i32) attributes {dimension_semantics = [#tpu.dimension_semantics<core_parallel>], iteration_bounds = array<i64: 2>, tpu.core_type = #tpu.core_type<sc_scalar_subcore>, window_params = []} {
    return
  }
}

module attributes {stable_mosaic.version = 11 : i64} {
  func.func @_coarse_attention_kernel(%arg0: i32, %arg1: memref<1x32x81xf32, #tpu.memory_space<vmem>>, %arg2: memref<1x16x64xf32, #tpu.memory_space<vmem>>, %arg3: memref<4x32xf32, #tpu.memory_space<vmem>>, %arg4: memref<4x16xf32, #tpu.memory_space<vmem>>, %arg5: memref<4x1xf32, #tpu.memory_space<vmem>>, %arg6: memref<1x4xf32, #tpu.memory_space<vmem>>, %arg7: memref<1x1xf32, #tpu.memory_space<smem>>, %arg8: memref<64x81xf32, #tpu.memory_space<vmem>>, %arg9: memref<16x9xf32, #tpu.memory_space<vmem>>, %arg10: memref<9x16xf32, #tpu.memory_space<vmem>>, %arg11: memref<16x16xf32, #tpu.memory_space<vmem>>, %arg12: memref<1x16x16xf32, #tpu.memory_space<vmem>>, %arg13: memref<9x9xf32, #tpu.memory_space<vmem>>) attributes {dimension_semantics = [#tpu.dimension_semantics<parallel>], iteration_bounds = array<i64: 2>, scalar_prefetch = 0 : i64, scratch_operands = 1 : i64, tpu.core_type = #tpu.core_type<tc>, window_params = [{transform_indices = @transform_0, window_bounds = array<i64: 1, 32, 81>}, {transform_indices = @transform_1, window_bounds = array<i64: 1, 16, 64>}, {pipeline_mode = #tpu.pipeline_mode<synchronous>, transform_indices = @transform_2, window_bounds = array<i64: 4, 32>}, {pipeline_mode = #tpu.pipeline_mode<synchronous>, transform_indices = @transform_3, window_bounds = array<i64: 4, 16>}, {pipeline_mode = #tpu.pipeline_mode<synchronous>, transform_indices = @transform_4, window_bounds = array<i64: 4, 1>}, {pipeline_mode = #tpu.pipeline_mode<synchronous>, transform_indices = @transform_5, window_bounds = array<i64: 1, 4>}, {transform_indices = @transform_6, window_bounds = array<i64: 1, 1>}, {pipeline_mode = #tpu.pipeline_mode<synchronous>, transform_indices = @transform_7, window_bounds = array<i64: 64, 81>}, {pipeline_mode = #tpu.pipeline_mode<synchronous>, transform_indices = @transform_8, window_bounds = array<i64: 16, 9>}, {pipeline_mode = #tpu.pipeline_mode<synchronous>, transform_indices = @transform_9, window_bounds = array<i64: 9, 16>}, {pipeline_mode = #tpu.pipeline_mode<synchronous>, transform_indices = @transform_10, window_bounds = array<i64: 16, 16>}, {transform_indices = @transform_11, window_bounds = array<i64: 1, 16, 16>}]} {
    %c0 = arith.constant 0 : index
    %c0_0 = arith.constant 0 : index
    %0 = vector.load %arg3[%c0, %c0_0] : memref<4x32xf32, #tpu.memory_space<vmem>>, vector<4x32xf32>
    %c0_1 = arith.constant 0 : index
    %c0_2 = arith.constant 0 : index
    %c0_3 = arith.constant 0 : index
    %1 = vector.load %arg1[%c0_1, %c0_2, %c0_3] : memref<1x32x81xf32, #tpu.memory_space<vmem>>, vector<1x32x81xf32>
    %2 = vector.shape_cast %1 : vector<1x32x81xf32> to vector<32x81xf32>
    %cst = arith.constant dense<0.000000e+00> : vector<4x81xf32>
    %3 = tpu.matmul %0, %2, %cst {dimension_numbers = #tpu.dot_dimension_numbers<[1], [0], [0], [1], [0, 0, 1, 1], [], []>} : vector<4x32xf32>, vector<32x81xf32>, vector<4x81xf32> -> vector<4x81xf32>
    %c0_4 = arith.constant 0 : index
    %c0_5 = arith.constant 0 : index
    %4 = vector.load %arg4[%c0_4, %c0_5] : memref<4x16xf32, #tpu.memory_space<vmem>>, vector<4x16xf32>
    %c0_6 = arith.constant 0 : index
    %c0_7 = arith.constant 0 : index
    %c0_8 = arith.constant 0 : index
    %5 = vector.load %arg2[%c0_6, %c0_7, %c0_8] : memref<1x16x64xf32, #tpu.memory_space<vmem>>, vector<1x16x64xf32>
    %6 = vector.shape_cast %5 : vector<1x16x64xf32> to vector<16x64xf32>
    %cst_9 = arith.constant dense<0.000000e+00> : vector<4x64xf32>
    %7 = tpu.matmul %4, %6, %cst_9 {dimension_numbers = #tpu.dot_dimension_numbers<[1], [0], [0], [1], [0, 0, 1, 1], [], []>} : vector<4x16xf32>, vector<16x64xf32>, vector<4x64xf32> -> vector<4x64xf32>
    %c0_10 = arith.constant 0 : index
    %c0_11 = arith.constant 0 : index
    %8 = vector.load %arg5[%c0_10, %c0_11] : memref<4x1xf32, #tpu.memory_space<vmem>>, vector<4x1xf32>
    %9 = vector.broadcast %8 : vector<4x1xf32> to vector<4x64xf32>
    %10 = arith.addf %7, %9 : vector<4x64xf32>
    %c0_12 = arith.constant 0 : index
    %c0_13 = arith.constant 0 : index
    %11 = vector.load %arg8[%c0_12, %c0_13] : memref<64x81xf32, #tpu.memory_space<vmem>>, vector<64x81xf32>
    %cst_14 = arith.constant dense<0.000000e+00> : vector<4x81xf32>
    %12 = tpu.matmul %10, %11, %cst_14 {dimension_numbers = #tpu.dot_dimension_numbers<[1], [0], [0], [1], [0, 0, 1, 1], [], []>} : vector<4x64xf32>, vector<64x81xf32>, vector<4x81xf32> -> vector<4x81xf32>
    %13 = arith.addf %3, %12 : vector<4x81xf32>
    %cst_15 = arith.constant 0.000000e+00 : f32
    %14 = vector.broadcast %cst_15 : f32 to vector<4x81xf32>
    %15 = arith.maximumf %13, %14 : vector<4x81xf32>
    %c0_16 = arith.constant 0 : index
    %c0_17 = arith.constant 0 : index
    %16 = vector.load %arg6[%c0_16, %c0_17] : memref<1x4xf32, #tpu.memory_space<vmem>>, vector<1x4xf32>
    %cst_18 = arith.constant dense<0.000000e+00> : vector<1x81xf32>
    %17 = tpu.matmul %16, %15, %cst_18 {dimension_numbers = #tpu.dot_dimension_numbers<[1], [0], [0], [1], [0, 0, 1, 1], [], []>} : vector<1x4xf32>, vector<4x81xf32>, vector<1x81xf32> -> vector<1x81xf32>
    %c0_19 = arith.constant 0 : index
    %c0_20 = arith.constant 0 : index
    %18 = memref.load %arg7[%c0_19, %c0_20] : memref<1x1xf32, #tpu.memory_space<smem>>
    %19 = vector.broadcast %18 : f32 to vector<1x81xf32>
    %20 = arith.addf %17, %19 : vector<1x81xf32>
    %cst_21 = arith.constant 0.000000e+00 : f32
    %21 = vector.broadcast %cst_21 : f32 to vector<1x81xf32>
    %22 = arith.subf %21, %20 : vector<1x81xf32>
    %23 = math.exp %22 : vector<1x81xf32>
    %cst_22 = arith.constant 1.000000e+00 : f32
    %24 = vector.broadcast %cst_22 : f32 to vector<1x81xf32>
    %25 = arith.addf %24, %23 : vector<1x81xf32>
    %26 = tpu.reciprocal %25 {approx = true} : vector<1x81xf32> -> vector<1x81xf32>
    %27 = vector.extract_strided_slice %26 {offsets = [0, 0], sizes = [1, 9], strides = [1, 1]} : vector<1x81xf32> to vector<1x9xf32>
    %c0_23 = arith.constant 0 : index
    %c0_24 = arith.constant 0 : index
    %28 = vector.load %arg13[%c0_23, %c0_24] : memref<9x9xf32, #tpu.memory_space<vmem>>, vector<1x9xf32>
    tpu.vector_store %arg13[%c0_23, %c0_24], %27 {strides = array<i32>} : memref<9x9xf32, #tpu.memory_space<vmem>>, vector<1x9xf32>,
    %29 = vector.extract_strided_slice %26 {offsets = [0, 9], sizes = [1, 9], strides = [1, 1]} : vector<1x81xf32> to vector<1x9xf32>
    %c1 = arith.constant 1 : index
    %c0_25 = arith.constant 0 : index
    %30 = vector.load %arg13[%c1, %c0_25] : memref<9x9xf32, #tpu.memory_space<vmem>>, vector<1x9xf32>
    tpu.vector_store %arg13[%c1, %c0_25], %29 {strides = array<i32>} : memref<9x9xf32, #tpu.memory_space<vmem>>, vector<1x9xf32>,
    %31 = vector.extract_strided_slice %26 {offsets = [0, 18], sizes = [1, 9], strides = [1, 1]} : vector<1x81xf32> to vector<1x9xf32>
    %c2 = arith.constant 2 : index
    %c0_26 = arith.constant 0 : index
    %32 = vector.load %arg13[%c2, %c0_26] : memref<9x9xf32, #tpu.memory_space<vmem>>, vector<1x9xf32>
    tpu.vector_store %arg13[%c2, %c0_26], %31 {strides = array<i32>} : memref<9x9xf32, #tpu.memory_space<vmem>>, vector<1x9xf32>,
    %33 = vector.extract_strided_slice %26 {offsets = [0, 27], sizes = [1, 9], strides = [1, 1]} : vector<1x81xf32> to vector<1x9xf32>
    %c3 = arith.constant 3 : index
    %c0_27 = arith.constant 0 : index
    %34 = vector.load %arg13[%c3, %c0_27] : memref<9x9xf32, #tpu.memory_space<vmem>>, vector<1x9xf32>
    tpu.vector_store %arg13[%c3, %c0_27], %33 {strides = array<i32>} : memref<9x9xf32, #tpu.memory_space<vmem>>, vector<1x9xf32>,
    %35 = vector.extract_strided_slice %26 {offsets = [0, 36], sizes = [1, 9], strides = [1, 1]} : vector<1x81xf32> to vector<1x9xf32>
    %c4 = arith.constant 4 : index
    %c0_28 = arith.constant 0 : index
    %36 = vector.load %arg13[%c4, %c0_28] : memref<9x9xf32, #tpu.memory_space<vmem>>, vector<1x9xf32>
    tpu.vector_store %arg13[%c4, %c0_28], %35 {strides = array<i32>} : memref<9x9xf32, #tpu.memory_space<vmem>>, vector<1x9xf32>,
    %37 = vector.extract_strided_slice %26 {offsets = [0, 45], sizes = [1, 9], strides = [1, 1]} : vector<1x81xf32> to vector<1x9xf32>
    %c5 = arith.constant 5 : index
    %c0_29 = arith.constant 0 : index
    %38 = vector.load %arg13[%c5, %c0_29] : memref<9x9xf32, #tpu.memory_space<vmem>>, vector<1x9xf32>
    tpu.vector_store %arg13[%c5, %c0_29], %37 {strides = array<i32>} : memref<9x9xf32, #tpu.memory_space<vmem>>, vector<1x9xf32>,
    %39 = vector.extract_strided_slice %26 {offsets = [0, 54], sizes = [1, 9], strides = [1, 1]} : vector<1x81xf32> to vector<1x9xf32>
    %c6 = arith.constant 6 : index
    %c0_30 = arith.constant 0 : index
    %40 = vector.load %arg13[%c6, %c0_30] : memref<9x9xf32, #tpu.memory_space<vmem>>, vector<1x9xf32>
    tpu.vector_store %arg13[%c6, %c0_30], %39 {strides = array<i32>} : memref<9x9xf32, #tpu.memory_space<vmem>>, vector<1x9xf32>,
    %41 = vector.extract_strided_slice %26 {offsets = [0, 63], sizes = [1, 9], strides = [1, 1]} : vector<1x81xf32> to vector<1x9xf32>
    %c7 = arith.constant 7 : index
    %c0_31 = arith.constant 0 : index
    %42 = vector.load %arg13[%c7, %c0_31] : memref<9x9xf32, #tpu.memory_space<vmem>>, vector<1x9xf32>
    tpu.vector_store %arg13[%c7, %c0_31], %41 {strides = array<i32>} : memref<9x9xf32, #tpu.memory_space<vmem>>, vector<1x9xf32>,
    %43 = vector.extract_strided_slice %26 {offsets = [0, 72], sizes = [1, 9], strides = [1, 1]} : vector<1x81xf32> to vector<1x9xf32>
    %c8 = arith.constant 8 : index
    %c0_32 = arith.constant 0 : index
    %44 = vector.load %arg13[%c8, %c0_32] : memref<9x9xf32, #tpu.memory_space<vmem>>, vector<1x9xf32>
    tpu.vector_store %arg13[%c8, %c0_32], %43 {strides = array<i32>} : memref<9x9xf32, #tpu.memory_space<vmem>>, vector<1x9xf32>,
    %c0_33 = arith.constant 0 : index
    %c0_34 = arith.constant 0 : index
    %45 = vector.load %arg9[%c0_33, %c0_34] : memref<16x9xf32, #tpu.memory_space<vmem>>, vector<16x9xf32>
    %c0_35 = arith.constant 0 : index
    %c0_36 = arith.constant 0 : index
    %46 = vector.load %arg13[%c0_35, %c0_36] : memref<9x9xf32, #tpu.memory_space<vmem>>, vector<9x9xf32>
    %c0_37 = arith.constant 0 : index
    %c0_38 = arith.constant 0 : index
    %47 = vector.load %arg10[%c0_37, %c0_38] : memref<9x16xf32, #tpu.memory_space<vmem>>, vector<9x16xf32>
    %cst_39 = arith.constant dense<0.000000e+00> : vector<9x16xf32>
    %48 = tpu.matmul %46, %47, %cst_39 {dimension_numbers = #tpu.dot_dimension_numbers<[1], [0], [0], [1], [0, 0, 1, 1], [], []>} : vector<9x9xf32>, vector<9x16xf32>, vector<9x16xf32> -> vector<9x16xf32>
    %cst_40 = arith.constant dense<0.000000e+00> : vector<16x16xf32>
    %49 = tpu.matmul %45, %48, %cst_40 {dimension_numbers = #tpu.dot_dimension_numbers<[1], [0], [0], [1], [0, 0, 1, 1], [], []>} : vector<16x9xf32>, vector<9x16xf32>, vector<16x16xf32> -> vector<16x16xf32>
    %c0_41 = arith.constant 0 : index
    %c0_42 = arith.constant 0 : index
    %50 = vector.load %arg11[%c0_41, %c0_42] : memref<16x16xf32, #tpu.memory_space<vmem>>, vector<16x16xf32>
    %51 = arith.addf %49, %50 : vector<16x16xf32>
    %c0_43 = arith.constant 0 : index
    %c0_44 = arith.constant 0 : index
    %c0_45 = arith.constant 0 : index
    %52 = vector.load %arg12[%c0_43, %c0_44, %c0_45] : memref<1x16x16xf32, #tpu.memory_space<vmem>>, vector<1x16x16xf32>
    %53 = vector.shape_cast %52 : vector<1x16x16xf32> to vector<16x16xf32>
    %54 = vector.shape_cast %51 : vector<16x16xf32> to vector<1x16x16xf32>
    tpu.vector_store %arg12[%c0_43, %c0_44, %c0_45], %54 {strides = array<i32>} : memref<1x16x16xf32, #tpu.memory_space<vmem>>, vector<1x16x16xf32>,
    return
  }
  func.func @transform_0(%arg0: i32) -> (i32, i32, i32) {
    %c0_i32 = arith.constant 0 : i32
    %c0_i32_0 = arith.constant 0 : i32
    %c0_i32_1 = arith.constant 0 : i32
    return %arg0, %c0_i32, %c0_i32_0 : i32, i32, i32
  }
  func.func @transform_1(%arg0: i32) -> (i32, i32, i32) {
    %c0_i32 = arith.constant 0 : i32
    %c0_i32_0 = arith.constant 0 : i32
    %c0_i32_1 = arith.constant 0 : i32
    return %arg0, %c0_i32, %c0_i32_0 : i32, i32, i32
  }
  func.func @transform_2(%arg0: i32) -> (i32, i32) {
    %c0_i32 = arith.constant 0 : i32
    %c0_i32_0 = arith.constant 0 : i32
    %c0_i32_1 = arith.constant 0 : i32
    return %c0_i32, %c0_i32_0 : i32, i32
  }
  func.func @transform_3(%arg0: i32) -> (i32, i32) {
    %c0_i32 = arith.constant 0 : i32
    %c0_i32_0 = arith.constant 0 : i32
    %c0_i32_1 = arith.constant 0 : i32
    return %c0_i32, %c0_i32_0 : i32, i32
  }
  func.func @transform_4(%arg0: i32) -> (i32, i32) {
    %c0_i32 = arith.constant 0 : i32
    %c0_i32_0 = arith.constant 0 : i32
    %c0_i32_1 = arith.constant 0 : i32
    return %c0_i32, %c0_i32_0 : i32, i32
  }
  func.func @transform_5(%arg0: i32) -> (i32, i32) {
    %c0_i32 = arith.constant 0 : i32
    %c0_i32_0 = arith.constant 0 : i32
    %c0_i32_1 = arith.constant 0 : i32
    return %c0_i32, %c0_i32_0 : i32, i32
  }
  func.func @transform_6(%arg0: i32) -> (i32, i32) {
    %c0_i32 = arith.constant 0 : i32
    %c0_i32_0 = arith.constant 0 : i32
    %c0_i32_1 = arith.constant 0 : i32
    return %c0_i32, %c0_i32_0 : i32, i32
  }
  func.func @transform_7(%arg0: i32) -> (i32, i32) {
    %c0_i32 = arith.constant 0 : i32
    %c0_i32_0 = arith.constant 0 : i32
    %c0_i32_1 = arith.constant 0 : i32
    return %c0_i32, %c0_i32_0 : i32, i32
  }
  func.func @transform_8(%arg0: i32) -> (i32, i32) {
    %c0_i32 = arith.constant 0 : i32
    %c0_i32_0 = arith.constant 0 : i32
    %c0_i32_1 = arith.constant 0 : i32
    return %c0_i32, %c0_i32_0 : i32, i32
  }
  func.func @transform_9(%arg0: i32) -> (i32, i32) {
    %c0_i32 = arith.constant 0 : i32
    %c0_i32_0 = arith.constant 0 : i32
    %c0_i32_1 = arith.constant 0 : i32
    return %c0_i32, %c0_i32_0 : i32, i32
  }
  func.func @transform_10(%arg0: i32) -> (i32, i32) {
    %c0_i32 = arith.constant 0 : i32
    %c0_i32_0 = arith.constant 0 : i32
    %c0_i32_1 = arith.constant 0 : i32
    return %c0_i32, %c0_i32_0 : i32, i32
  }
  func.func @transform_11(%arg0: i32) -> (i32, i32, i32) {
    %c0_i32 = arith.constant 0 : i32
    %c0_i32_0 = arith.constant 0 : i32
    %c0_i32_1 = arith.constant 0 : i32
    return %arg0, %c0_i32, %c0_i32_0 : i32, i32, i32
  }
}

module attributes {stable_mosaic.version = 11 : i64} {
  func.func @_gated_wconv_kernel(%arg0: i32, %arg1: i32, %arg2: memref<1x8x256xf32, #tpu.memory_space<vmem>>, %arg3: memref<1x1x256xf32, #tpu.memory_space<vmem>>, %arg4: memref<8x8xf32, #tpu.memory_space<vmem>>, %arg5: memref<8x1xf32, #tpu.memory_space<vmem>>, %arg6: memref<1x8x256xf32, #tpu.memory_space<vmem>>) attributes {dimension_semantics = [#tpu.dimension_semantics<parallel>, #tpu.dimension_semantics<parallel>], iteration_bounds = array<i64: 2, 1>, scalar_prefetch = 0 : i64, scratch_operands = 0 : i64, tpu.core_type = #tpu.core_type<tc>, window_params = [{transform_indices = @transform_0, window_bounds = array<i64: 1, 8, 256>}, {transform_indices = @transform_1, window_bounds = array<i64: 1, 1, 256>}, {pipeline_mode = #tpu.pipeline_mode<synchronous>, transform_indices = @transform_2, window_bounds = array<i64: 8, 8>}, {pipeline_mode = #tpu.pipeline_mode<synchronous>, transform_indices = @transform_3, window_bounds = array<i64: 8, 1>}, {transform_indices = @transform_4, window_bounds = array<i64: 1, 8, 256>}]} {
    %c0 = arith.constant 0 : index
    %c0_0 = arith.constant 0 : index
    %0 = vector.load %arg4[%c0, %c0_0] : memref<8x8xf32, #tpu.memory_space<vmem>>, vector<8x8xf32>
    %c0_1 = arith.constant 0 : index
    %c0_2 = arith.constant 0 : index
    %c0_3 = arith.constant 0 : index
    %1 = vector.load %arg2[%c0_1, %c0_2, %c0_3] : memref<1x8x256xf32, #tpu.memory_space<vmem>>, vector<1x8x256xf32>
    %2 = vector.shape_cast %1 : vector<1x8x256xf32> to vector<8x256xf32>
    %cst = arith.constant dense<0.000000e+00> : vector<8x256xf32>
    %3 = tpu.matmul %0, %2, %cst {dimension_numbers = #tpu.dot_dimension_numbers<[1], [0], [0], [1], [0, 0, 1, 1], [], []>} : vector<8x8xf32>, vector<8x256xf32>, vector<8x256xf32> -> vector<8x256xf32>
    %c0_4 = arith.constant 0 : index
    %c0_5 = arith.constant 0 : index
    %c0_6 = arith.constant 0 : index
    %4 = vector.load %arg3[%c0_4, %c0_5, %c0_6] : memref<1x1x256xf32, #tpu.memory_space<vmem>>, vector<1x1x256xf32>
    %5 = vector.shape_cast %4 : vector<1x1x256xf32> to vector<1x256xf32>
    %6 = vector.broadcast %5 : vector<1x256xf32> to vector<8x256xf32>
    %7 = arith.mulf %3, %6 : vector<8x256xf32>
    %c0_7 = arith.constant 0 : index
    %c0_8 = arith.constant 0 : index
    %8 = vector.load %arg5[%c0_7, %c0_8] : memref<8x1xf32, #tpu.memory_space<vmem>>, vector<8x1xf32>
    %9 = vector.broadcast %8 : vector<8x1xf32> to vector<8x256xf32>
    %10 = arith.addf %7, %9 : vector<8x256xf32>
    %c0_9 = arith.constant 0 : index
    %c0_10 = arith.constant 0 : index
    %c0_11 = arith.constant 0 : index
    %11 = vector.load %arg6[%c0_9, %c0_10, %c0_11] : memref<1x8x256xf32, #tpu.memory_space<vmem>>, vector<1x8x256xf32>
    %12 = vector.shape_cast %11 : vector<1x8x256xf32> to vector<8x256xf32>
    %13 = vector.shape_cast %10 : vector<8x256xf32> to vector<1x8x256xf32>
    tpu.vector_store %arg6[%c0_9, %c0_10, %c0_11], %13 {strides = array<i32>} : memref<1x8x256xf32, #tpu.memory_space<vmem>>, vector<1x8x256xf32>,
    return
  }
  func.func @transform_0(%arg0: i32, %arg1: i32) -> (i32, i32, i32) {
    %c0_i32 = arith.constant 0 : i32
    %c0_i32_0 = arith.constant 0 : i32
    return %arg0, %c0_i32, %arg1 : i32, i32, i32
  }
  func.func @transform_1(%arg0: i32, %arg1: i32) -> (i32, i32, i32) {
    %c0_i32 = arith.constant 0 : i32
    %c0_i32_0 = arith.constant 0 : i32
    return %arg0, %c0_i32, %arg1 : i32, i32, i32
  }
  func.func @transform_2(%arg0: i32, %arg1: i32) -> (i32, i32) {
    %c0_i32 = arith.constant 0 : i32
    %c0_i32_0 = arith.constant 0 : i32
    %c0_i32_1 = arith.constant 0 : i32
    return %c0_i32, %c0_i32_0 : i32, i32
  }
  func.func @transform_3(%arg0: i32, %arg1: i32) -> (i32, i32) {
    %c0_i32 = arith.constant 0 : i32
    %c0_i32_0 = arith.constant 0 : i32
    %c0_i32_1 = arith.constant 0 : i32
    return %c0_i32, %c0_i32_0 : i32, i32
  }
  func.func @transform_4(%arg0: i32, %arg1: i32) -> (i32, i32, i32) {
    %c0_i32 = arith.constant 0 : i32
    %c0_i32_0 = arith.constant 0 : i32
    return %arg0, %c0_i32, %arg1 : i32, i32, i32
  }
}

</mosaic_0001>

<bundles_post_ra>
// kernel: grid_attention_forward.3
= control target key start
LH: loop header
LB: loop body
LE: loop exit
PB: predicated region body
PF: predicated region fallthrough
CT: control target
= control target key end

     0   :  { %s567_s15 = smov 0   ;;  %s569_s16 = smov 0   ;;  %s609_s0 = inlined_call_operand.vmem [shape: f32[2,8,256], index: 0, kind: input, shape index: {}]   ;;  %s610_s1 = inlined_call_operand.vmem [shape: f32[2,1,256], index: 1, kind: input, shape index: {}]   ;;  %s611_s2 = inlined_call_operand.vmem [shape: f32[8,8], index: 2, kind: input, shape index: {}]   ;;  %s612_s3 = inlined_call_operand.vmem [shape: f32[8,1], index: 3, kind: input, shape index: {}]   ;;  %s613_s4 = inlined_call_operand.vmem [shape: f32[2,8,256], index: 4, kind: output, shape index: {}]  }
   0x1   :  { %s571_s17 = smov 0  }
   0x2 LB: > { %s26_s18 = sadd.s32 1, %s534_s16  ;;  %p478_p0 = scmp.ge.s32.totalorder %s538_s17, 1  ;;  %s538_s17 = sphi %s571_s17, %s14_s17   ;;  %s534_s16 = sphi %s569_s16, %s615_s16   ;;  %s530_s15 = sphi %s567_s15, %s614_s15  }
   0x3   : > { %p28_p1 = scmp.ge.s32.totalorder %s26_s18, 2  ;;  %p199_p2 = scmp.lt.s32.totalorder %s538_s17, 3 }
   0x5   : > { %s617_s18 = smov (%p28_p1, %s26_s18), 0  ;;  %p200_p3 = pnand %p478_p0, %p199_p2 }
   0x6   : > { %p242_p4 = scmp.lt.s32.totalorder (!%p200_p3), %s530_s15, 1  ;;  %v362_v0 = vld [vmem:[%s612_s3] sm:$0xff] (!%p200_p3)  ;;  %v540_v1 = vmov (!%p200_p3), 0.0   ;;  %v541_v2 = vmov (!%p200_p3), 0   ;;  %vm273_vm0 = vcmask (!%p200_p3), 64512   ;;  %v350_v6 = vlaneseq (!%p200_p3) }
   0x7   : > { %203 = sbr.rel (%p200_p3) target bundleno = 238 (0xee), region = 36  ;;  %341 = vmatprep.mubr.f32.mxu0 (!%p200_p3), %v540_v1  ;;  %515 = vset.pattern.permute.xlu0 (!%p200_p3), %v541_v2  ;;  %v270_v5 = vld [vmem:[%s611_s2] sm:$0xff] (!%p200_p3) }
   0x8   : > { %365 = vperm.xlu0 (!%p200_p3), %515, %v362_v0   ;;  %v351_v7 = vshrl.u32 (!%p200_p3), %v350_v6, 7 }
   0xa   : > { %v352_v8 = vsub.s32 (!%p200_p3), 0, %v351_v7  ;;  %v356_v10 = vsub.s32 (!%p200_p3), 1, %v351_v7 }
   0xe   : > { %s619_s15 = smov (!%p242_p4, %s530_s15), 1 }
   0xf   : > { %s487_s21 = sshll.u32 %s619_s15, 4  ;;  %s481_s27 = sshll.u32 %s619_s15, 1 }
  0x10   : > { %s249_s24 = scalar_lea.vmem %s609_s0, %s487_s21  ;;  %s258_s30 = scalar_lea.vmem %s610_s1, %s481_s27 }
  0x11   : > { %v272_v3 = vld [vmem:[%s249_s24 + $0x8] sm:$0xff]  ;;  %v271_v4 = vld [vmem:[%s249_s24] sm:$0xff]  ;;  %s268_s7 = scalar_lea.vmem %s613_s4, %s487_s21 }
  0x12   : > { %277 = vmatprep.subr.mxu0 %v272_v3  ;;  %v348_v9 = vld [vmem:[%s258_s30] sm:$0x3] }
  0x13   : > { %278 = vmatpush1.msra.mxu0 %v271_v4  ;;  %v353_v11 = vrot.slane %v348_v9, %v352_v8  ;;  %v357_v12 = vrot.slane %v348_v9, %v356_v10 }
  0x14   : > { %484 = vmatmul.mubr.msk.f32.vlgmr.msra.gmra.mrb[0].mxu0 %vm273_vm0, %v270_v5 }
  0x87   : > { %v366_v14 = vpop.permute.xlu0 %365 }
  0xe7   : > { %v343_v13 = vpop.f32.mrb[0].mxu0 }
  0xe8   : > { %v360_v15 = vmul.f32 %v353_v11, %v343_v13  ;;  %v345_v16 = vpop.f32.mrb[1].mxu0 }
  0xe9   : > { %v361_v17 = vmul.f32 %v357_v12, %v345_v16 }
  0xea   : > { %v368_v18 = vadd.f32 %v366_v14, %v360_v15 }
  0xeb   : > { %v369_v19 = vadd.f32 %v366_v14, %v361_v17 }
  0xec   : > { %370 = vst [vmem:[%s268_s7] sm:$0xff] %v368_v18 }
  0xed   : > { %371 = vst [vmem:[%s268_s7 + $0x8] sm:$0xff] %v369_v19 }
  0xee PF: > { %s14_s17 = sadd.s32 1, %s538_s17   ;;  %s614_s15 = smov %s534_s16 }
  0xef   : > { %p11_p5 = scmp.ge.s32.totalorder %s14_s17, 4   ;;  %s615_s16 = smov %s617_s18 }
  0xf1   :  { %13 = sbr.rel (!%p11_p5) target bundleno = 2 (0x2), region = 69 }

// kernel: grid_attention_forward.2
= control target key start
LH: loop header
LB: loop body
LE: loop exit
PB: predicated region body
PF: predicated region fallthrough
CT: control target
= control target key end

     0   :  { %s1276_s19 = smov 0   ;;  %s1386_s0 = inlined_call_operand.vmem [shape: f32[2,32,81], index: 0, kind: input, shape index: {}]   ;;  %s1387_s1 = inlined_call_operand.vmem [shape: f32[2,16,64], index: 1, kind: input, shape index: {}]   ;;  %s1388_s2 = inlined_call_operand.vmem [shape: f32[4,32], index: 2, kind: input, shape index: {}]   ;;  %s1389_s3 = inlined_call_operand.vmem [shape: f32[4,16], index: 3, kind: input, shape index: {}]   ;;  %s1390_s4 = inlined_call_operand.vmem [shape: f32[4,1], index: 4, kind: input, shape index: {}]   ;;  %s1391_s5 = inlined_call_operand.vmem [shape: f32[1,4], index: 5, kind: input, shape index: {}]   ;;  %s1392_s6 = inlined_call_operand.<no memory space> [shape: f32[1,1], index: 6, kind: input, shape index: {}]   ;;  %s1393_s7 = inlined_call_operand.vmem [shape: f32[64,81], index: 7, kind: input, shape index: {}]   ;;  %s1394_s8 = inlined_call_operand.vmem [shape: f32[16,9], index: 8, kind: input, shape index: {}]   ;;  %s1395_s9 = inlined_call_operand.vmem [shape: f32[9,16], index: 9, kind: input, shape index: {}]   ;;  %s1396_s10 = inlined_call_operand.vmem [shape: f32[16,16], index: 10, kind: input, shape index: {}]   ;;  %s1397_s11 = inlined_call_operand.vmem [shape: f32[2,16,16], index: 11, kind: output, shape index: {}]  }
   0x1   :  { %16 = sst [smem:[#allocation3]] %s1392_s6 }
   0x2 LB: > { %s1021_s20 = sadd.s32 4294967295, %s1198_s19   ;;  %p1025_p0 = scmp.ge.s32.totalorder %s1198_s19, 1  ;;  %s1198_s19 = sphi %s1276_s19, %s22_s19  }
   0x3   : > { %p348_p1 = scmp.lt.s32.totalorder %s1198_s19, 3 }
   0x5   : > { %p349_p2 = pnand %p1025_p0, %p348_p1 }
   0x6   : > { %p393_p3 = scmp.lt.s32.totalorder (!%p349_p2), %s1021_s20, 1  ;;  %v1200_v0 = vmov (!%p349_p2), 0.0|0.0   ;;  %vm1201_vm0 = vmmov (!%p349_p2), 0   ;;  %v1202_v1 = vmov (!%p349_p2), 0.0   ;;  %v416_v2 = vld [vmem:[%s1390_s4] sm:$0xf] (!%p349_p2) }
   0x7   : > { %352 = sbr.rel (%p349_p2) target bundleno = 1273 (0x4f9), region = 64  ;;  %1131 = vmatprep.subr.bf16.mxu0 (!%p349_p2), %v1200_v0  ;;  %1079 = vmatprep.mubr.msk.f32.mxu0 (!%p349_p2), %vm1201_vm0, %v1202_v1  ;;  %v496_v3 = vld [vmem:[%s1393_s7] sm:$0xff] (!%p349_p2)  ;;  %v497_v4 = vld [vmem:[%s1393_s7 + $0x8] sm:$0xff] (!%p349_p2)  ;;  %v1203_v5 = vmov (!%p349_p2), 0   ;;  %v498_v7 = vld [vmem:[%s1393_s7 + $0x10] sm:$0xff] (!%p349_p2)  ;;  %vm422_vm1 = vcmask (!%p349_p2), 130048  }
   0x8   : > { %1187 = vset.pattern.permute.xlu0 (!%p349_p2), %v1203_v5  ;;  %1134 = vmatprep.subr.bf16.mxu1 (!%p349_p2), %v1200_v0  ;;  %v1135_v6 = vpack.c.bf16 (!%p349_p2), %v497_v4, %v496_v3  ;;  %v499_v8 = vld [vmem:[%s1393_s7 + $0x18] sm:$0xff] (!%p349_p2)  ;;  %v500_v10 = vld [vmem:[%s1393_s7 + $0x20] sm:$0xff] (!%p349_p2)  ;;  %v501_v11 = vld [vmem:[%s1393_s7 + $0x28] sm:$0xff] (!%p349_p2)  ;;  %vm504_vm2 = vcmask (!%p349_p2), 523264   ;;  %vm578_vm3 = vcmask (!%p349_p2), 261120   ;;  %vm660_vm4 = vcmask (!%p349_p2), 1043456  }
   0x9   : > { %419 = vperm.xlu0 (!%p349_p2), %1187, %v416_v2   ;;  %1098 = vmatprep.mubr.msk.f32.mxu1 (!%p349_p2), %vm1201_vm0, %v1202_v1  ;;  %v1138_v9 = vpack.c.bf16 (!%p349_p2), %v499_v8, %v498_v7  ;;  %v1141_v15 = vpack.c.bf16 (!%p349_p2), %v501_v11, %v500_v10  ;;  %v413_v16 = vld [vmem:[%s1389_s3] sm:$0xf] (!%p349_p2)  ;;  %v502_v17 = vld [vmem:[%s1393_s7 + $0x30] sm:$0xff] (!%p349_p2)  ;;  %v503_v18 = vld [vmem:[%s1393_s7 + $0x38] sm:$0xff] (!%p349_p2)  ;;  %vm656_vm5 = vcmask (!%p349_p2), 31744   ;;  %s654_s16 = sld [smem:[#allocation3]] (!%p349_p2) }
   0xa   : > { %1136 = vmatpush3.bf16.msra.mxu1 (!%p349_p2), %v1135_v6  ;;  %v1144_v19 = vpack.c.bf16 (!%p349_p2), %v503_v18, %v502_v17  ;;  %v408_v30 = vld [vmem:[%s1388_s2] sm:$0xf] (!%p349_p2)  ;;  %vm739_vm6 = vcmask (!%p349_p2), 65536   ;;  %v779_v45 = vld [vmem:[%s1395_s9 + $0x8] sm:$0x1] (!%p349_p2)  ;;  %vm787_vm7 = vcmask (!%p349_p2), 1040384  }
   0xb   : > { %1137 = vmatprep.subr.bf16.mxu1 (!%p349_p2), %v1200_v0  ;;  %v653_v34 = vld [vmem:[%s1391_s5] sm:$0x1] (!%p349_p2)  ;;  %s1204_s22 = smov (!%p349_p2), 110   ;;  %s1205_s23 = smov (!%p349_p2), 119   ;;  %vm1206_vm8 = vmmov (!%p349_p2), 1   ;;  %vm780_vm10 = vcmask (!%p349_p2), 72704  }
   0xc   : > { %v778_v44 = vld [vmem:[%s1395_s9] sm:$0xff] (!%p349_p2)  ;;  %vm1344_vm9 = vmpackc.low (!%p349_p2), %vm787_vm7, %vm1206_vm8  ;;  %s1207_s24 = smov (!%p349_p2), 101   ;;  %s1208_s25 = smov (!%p349_p2), 92   ;;  %v775_v62 = vld [vmem:[%s1394_s8 + $0x8] sm:$0xff] (!%p349_p2) }
   0xd   : > { %v1152_v46 = vpack.c.bf16 (!%p349_p2), %v779_v45, %v778_v44  ;;  %s1210_s27 = smov (!%p349_p2), 74   ;;  %s1211_s28 = smov (!%p349_p2), 65   ;;  %v774_v58 = vld [vmem:[%s1394_s8] sm:$0xff] (!%p349_p2)  ;;  %v867_v63 = vld [vmem:[%s1396_s10 + $0x8] sm:$0xff] (!%p349_p2) }
   0xe   : > { %s1401_s20 = smov (!%p393_p3, %s1021_s20), 1  ;;  %1139 = vmatpush3.bf16.msra.mxu1 %v1138_v9 }
   0xf   : > { %s1046_s30 = sshll.u32 %s1401_s20, 4  ;;  %1140 = vmatprep.subr.bf16.mxu1 %v1200_v0  ;;  %s1045_s26 = sshll.u32 %s1401_s20, 5  ;;  %v655_v35 = vstv %s654_s16 }
  0x10   : > { %s402_s14 = scalar_lea.vmem %s1387_s1, %s1046_s30  ;;  %s397_s29 = scalar_lea.vmem %s1386_s0, %s1045_s26 }
  0x11   : > { %v414_v12 = vld [vmem:[%s402_s14] sm:$0xff]  ;;  %v415_v13 = vld [vmem:[%s402_s14 + $0x8] sm:$0xff]  ;;  %v411_v27 = vld [vmem:[%s397_s29 + $0x10] sm:$0xff]  ;;  %s1209_s26 = smov 83  }
  0x12   : > { %v1132_v14 = vpack.c.bf16 %v415_v13, %v414_v12  ;;  %1142 = vmatpush3.bf16.msra.mxu1 %v1141_v15  ;;  %v409_v20 = vld [vmem:[%s397_s29] sm:$0xff]  ;;  %v410_v21 = vld [vmem:[%s397_s29 + $0x8] sm:$0xff]  ;;  %v412_v28 = vld [vmem:[%s397_s29 + $0x18] sm:$0xff]  ;;  %s1212_s29 = smov 56  }
  0x13   : > { %1143 = vmatprep.subr.bf16.mxu1 %v1200_v0  ;;  %v1147_v24 = vpack.c.bf16 %v410_v21, %v409_v20  ;;  %v1150_v29 = vpack.c.bf16 %v412_v28, %v411_v27 }
  0x14   : > { %1133 = vmatpush3.bf16.msra.mxu0 %v1132_v14 }
  0x15   : > { %1112 = vmatprep.subr.mxu0 %v1202_v1 }
  0x16   : > { %1145 = vmatpush3.bf16.msra.mxu1 %v1144_v19 }
  0x17   : > { %1080 = vmatmul.mubr.msk.f32.vlgmr.msra.gmra.mrb[0].mxu0 %vm422_vm1, %v413_v16  ;;  %1146 = vmatprep.subr.bf16.mxu1 %v1200_v0 }
  0x18   : > { %1114 = vmatprep.mubr.msk.f32.mxu0 %vm1201_vm0, %v1202_v1 }
  0x88   : > { %v420_v22 = vpop.permute.xlu0 %419 }
  0xea   : > { %v492_v23 = vpop.f32.mrb[0].mxu0 }
  0xeb   : > { %v493_v25 = vadd.f32 %v492_v23, %v420_v22  ;;  %v1081_v26 = vpop.f32.mrb[1].mxu0 }
  0xed   : > { %1099 = vmatmul.mubr.msk.f32.vlgmr.msra.gmra.mrb[0].mxu1 %vm504_vm2, %v493_v25 }
  0xee   : > { %1148 = vmatpush3.bf16.msra.mxu1 %v1147_v24  ;;  %1109 = vmatprep.mubr.msk.f32.mxu1 %vm1201_vm0, %v1202_v1 }
  0xef   : > { %1149 = vmatprep.subr.bf16.mxu1 %v1200_v0  ;;  %v866_v0 = vld [vmem:[%s1396_s10] sm:$0xff] }
  0xf2   : > { %1151 = vmatpush3.bf16.msra.mxu1 %v1150_v29 }
  0xf5   : > { %1110 = vmatmul.mubr.msk.f32.vlgmr.msra.gmra.mrb[0].mxu1 %vm578_vm3, %v408_v30 }
 0x1c8   : > { %v648_v31 = vpop.f32.mrb[0].mxu1 }
 0x1c9   : > { %v652_v32 = vmax.f32 %v648_v31, 0.0  ;;  %v1111_v33 = vpop.f32.mrb[1].mxu1 }
 0x1cb   : > { %1113 = vmatpush3.msk.msra.mxu0 %vm660_vm4, %v652_v32 }
 0x1cc   : > { %1115 = vmatmul.mubr.msk.f32.vlgmr.msra.gmra.mrb[2].mxu0 %vm656_vm5, %v653_v34  ;;  %1154 = vmatprep.subr.msk.bf16.mxu0 %vm1344_vm9, %v1152_v46 }
 0x1cd   : > { %1157 = vmatpush3.bf16.msk.msra.mxu0 %vm1344_vm9, %v1152_v46 }
 0x29f   : > { %v730_v36 = vpop.f32.mrb[2].mxu0 }
 0x2a0   : > { %v731_v37 = vadd.f32 %v730_v36, %v655_v35  ;;  %v1116_v38 = vpop.f32.mrb[3].mxu0 }
 0x2a2   : > { %v734_v39 = vsub.f32 0.0, %v731_v37 }
 0x2a4   : > { %v735_v40 = vmul.f32 1.442695, %v734_v39 }
 0x2a6   : > { %1188 = vpow2.f32 %v735_v40 }
 0x2b0   : > { %v1189_v41 = vpop.eup %1188 }
 0x2b1   : > { %v737_v42 = vadd.f32 1.0, %v1189_v41 }
 0x2b3   : > { %1190 = vrcp.f32 %v737_v42 }
 0x2bd   : > { %v1191_v43 = vpop.eup %1190 }
 0x2be   : > { %746 = vrot.lane.b32.xlu1 %v1191_v43, %s1204_s22  ;;  %742 = vrot.lane.b32.xlu0 %v1191_v43, %s1205_s23  ;;  %740 = vst.msk [vmem:[#allocation2] sm:$0x1] %vm739_vm6, %v1191_v43  ;;  %s407_s23 = scalar_lea.vmem %s1397_s11, %s1046_s30 }
 0x2c2   : > { %750 = vrot.lane.b32.xlu1 %v1191_v43, %s1207_s24  ;;  %754 = vrot.lane.b32.xlu0 %v1191_v43, %s1208_s25 }
 0x2c6   : > { %758 = vrot.lane.b32.xlu1 %v1191_v43, %s1209_s26  ;;  %762 = vrot.lane.b32.xlu0 %v1191_v43, %s1210_s27 }
 0x2ca   : > { %766 = vrot.lane.b32.xlu1 %v1191_v43, %s1211_s28  ;;  %770 = vrot.lane.b32.xlu0 %v1191_v43, %s1212_s29 }
 0x330   : > { %v747_v48 = vpop.permute.xlu1 %746  ;;  %v743_v49 = vpop.permute.xlu0 %742 }
 0x331   : > { %749 = vst.msk [vmem:[#allocation2 + $0x2] sm:$0x1] %vm739_vm6, %v747_v48  ;;  %745 = vst.msk [vmem:[#allocation2 + $0x1] sm:$0x1] %vm739_vm6, %v743_v49 }
 0x334   : > { %v751_v50 = vpop.permute.xlu1 %750  ;;  %v755_v51 = vpop.permute.xlu0 %754 }
 0x335   : > { %753 = vst.msk [vmem:[#allocation2 + $0x3] sm:$0x1] %vm739_vm6, %v751_v50  ;;  %757 = vst.msk [vmem:[#allocation2 + $0x4] sm:$0x1] %vm739_vm6, %v755_v51 }
 0x338   : > { %v759_v52 = vpop.permute.xlu1 %758  ;;  %v763_v53 = vpop.permute.xlu0 %762 }
 0x339   : > { %761 = vst.msk [vmem:[#allocation2 + $0x5] sm:$0x1] %vm739_vm6, %v759_v52  ;;  %765 = vst.msk [vmem:[#allocation2 + $0x6] sm:$0x1] %vm739_vm6, %v763_v53 }
 0x33c   : > { %v767_v54 = vpop.permute.xlu1 %766  ;;  %v771_v55 = vpop.permute.xlu0 %770 }
 0x33d   : > { %769 = vst.msk [vmem:[#allocation2 + $0x7] sm:$0x1] %vm739_vm6, %v767_v54  ;;  %773 = vst.msk [vmem:[#allocation2 + $0x8] sm:$0x1] %vm739_vm6, %v771_v55 }
 0x344   : > { %v776_v56 = vld [vmem:[#allocation2] sm:$0xff]  ;;  %v777_v57 = vld [vmem:[#allocation2 + $0x8] sm:$0x1] }
 0x345   : > { %1121 = vmatprep.mubr.msk.f32.mxu0 %vm780_vm10, %v776_v56 }
 0x346   : > { %1122 = vmatmul.mubr.msk.f32.vlgmr.msra.gmra.mrb[4].mxu0 %vm780_vm10, %v777_v57 }
 0x347   : > { %1128 = vmatprep.mubr.msk.f32.mxu0 %vm780_vm10, %v774_v58 }
 0x419   : > { %v1123_v59 = vpop.f32.mrb[4].mxu0 }
 0x41a   : > { %v857_v60 = vpop.f32.mrb[5].mxu0 }
 0x41b   : > { %v1158_v61 = vpack.c.bf16 %v1123_v59, %v857_v60 }
 0x41d   : > { %1160 = vmatprep.subr.msk.bf16.mxu0 %vm1344_vm9, %v1158_v61 }
 0x41e   : > { %1163 = vmatpush3.bf16.msk.msra.mxu0 %vm1344_vm9, %v1158_v61 }
 0x421   : > { %1129 = vmatmul.mubr.msk.f32.vlgmr.msra.gmra.mrb[6].mxu0 %vm780_vm10, %v775_v62 }
 0x4f4   : > { %v1130_v1 = vpop.f32.mrb[6].mxu0 }
 0x4f5   : > { %v949_v2 = vadd.f32 %v1130_v1, %v867_v63  ;;  %v943_v3 = vpop.f32.mrb[7].mxu0 }
 0x4f6   : > { %v944_v4 = vadd.f32 %v943_v3, %v866_v0 }
 0x4f7   : > { %953 = vst.msk [vmem:[%s407_s23 + $0x8] sm:$0xff] %vm422_vm1, %v949_v2 }
 0x4f8   : > { %952 = vst.msk [vmem:[%s407_s23] sm:$0xff] %vm422_vm1, %v944_v4 }
 0x4f9 PF: > { %s22_s19 = sadd.s32 1, %s1198_s19  }
 0x4fa   : > { %p19_p4 = scmp.ge.s32.totalorder %s22_s19, 4  }
 0x4fc   :  { %21 = sbr.rel (!%p19_p4) target bundleno = 2 (0x2), region = 97 }

</bundles_post_ra>
